<compile_context>
chip_gen: v5e
topology: v5e:2x2
jax: 0.10.0
libtpu: 0.0.40
codegen_flags: <defaults>
</compile_context>

<pallas_src>
import functools

import jax
import jax.numpy as jnp
from jax.experimental import pallas as pl
from jax.experimental.pallas import tpu as pltpu


# -----------------------------------------------------------------------------
# Kernels
# -----------------------------------------------------------------------------
def _rope_kernel_fullwidth(pos_ref, inv2_ref, cos_ref, sin_ref, *, scale):
    # pos_ref : [1, T, 1]  f32  (positions for this tile, on the sublane axis)
    # inv2_ref: [1, D]     f32  (concat(inv_freq, inv_freq), lane axis, grid-resident)
    # cos_ref / sin_ref: [1, T, D] in the output dtype
    pos = pos_ref[0]                  # [T, 1]
    inv2 = inv2_ref[...]              # [1, D]
    freqs = pos * inv2                # [T, D] f32 outer product on the VPU
    c = jnp.cos(freqs)
    s = jnp.sin(freqs)
    if scale != 1.0:
        c = c * scale
        s = s * scale
    cos_ref[0] = c.astype(cos_ref.dtype)
    sin_ref[0] = s.astype(sin_ref.dtype)


def _rope_kernel_halfwidth(pos_ref, inv_ref, cos_ref, sin_ref, *, scale, half):
    # Used when half % 128 == 0: trig on the half-width freqs only, write both halves
    # (both slice starts are multiples of 128 -> lane-aligned stores).
    pos = pos_ref[0]                  # [T, 1]
    inv = inv_ref[...]                # [1, half]
    freqs = pos * inv                 # [T, half] f32
    c = jnp.cos(freqs)
    s = jnp.sin(freqs)
    if scale != 1.0:
        c = c * scale
        s = s * scale
    c = c.astype(cos_ref.dtype)
    s = s.astype(sin_ref.dtype)
    cos_ref[0, :, :half] = c
    cos_ref[0, :, half:] = c
    sin_ref[0, :, :half] = s
    sin_ref[0, :, half:] = s


# -----------------------------------------------------------------------------
# Wrapper
# -----------------------------------------------------------------------------
def smallthinker_rotary_embedding(x, position_ids, inv_freq, attention_scaling=1.0):
    """Returns (cos, sin), each of shape [B, S, head_dim], dtype == x.dtype."""
    B, S = position_ids.shape
    half = int(inv_freq.shape[0])
    D = 2 * half
    out_dtype = x.dtype
    scale = float(attention_scaling)
    P = B * S

    # ---- choose a row tile over the flattened positions -------------------
    T_MAX = 512
    if P <= T_MAX:
        T, P_pad = P, P
    else:
        T = None
        for cand in (512, 256, 128):
            if P % cand == 0:
                T = cand
                break
        if T is None:
            T = T_MAX
        P_pad = ((P + T - 1) // T) * T
    num_tiles = P_pad // T

    # ---- prepare inputs -----------------------------------------------------
    pos = position_ids.reshape(P).astype(jnp.float32)
    if P_pad != P:
        pos = jnp.pad(pos, (0, P_pad - P))
    pos = pos.reshape(num_tiles, T, 1)          # positions on the sublane axis

    inv_f32 = inv_freq.astype(jnp.float32).reshape(1, half)

    half_dense = (half % 128 == 0)
    if half_dense:
        inv_arg = inv_f32                                       # [1, half]
        kernel = functools.partial(_rope_kernel_halfwidth, scale=scale, half=half)
        inv_block = (1, half)
        trig_elems = 2 * P_pad * half
    else:
        inv_arg = jnp.concatenate([inv_f32, inv_f32], axis=-1)  # [1, D]
        kernel = functools.partial(_rope_kernel_fullwidth, scale=scale)
        inv_block = (1, D)
        trig_elems = 2 * P_pad * D

    out_bytes = jnp.dtype(out_dtype).itemsize
    cost = pl.CostEstimate(
        flops=4 * P_pad * D,
        transcendentals=trig_elems,
        bytes_accessed=P_pad * 4 + D * 4 + 2 * P_pad * D * out_bytes,
    )

    cos, sin = pl.pallas_call(
        kernel,
        out_shape=(
            jax.ShapeDtypeStruct((num_tiles, T, D), out_dtype),
            jax.ShapeDtypeStruct((num_tiles, T, D), out_dtype),
        ),
        grid=(num_tiles,),
        in_specs=[
            pl.BlockSpec((1, T, 1), lambda i: (i, 0, 0)),
            pl.BlockSpec(inv_block, lambda i: (0, 0)),   # resident across the grid
        ],
        out_specs=(
            pl.BlockSpec((1, T, D), lambda i: (i, 0, 0)),
            pl.BlockSpec((1, T, D), lambda i: (i, 0, 0)),
        ),
        compiler_params=pltpu.CompilerParams(
            dimension_semantics=("parallel",),
            vmem_limit_bytes=32 * 1024 * 1024,
        ),
        cost_estimate=cost,
    )(pos, inv_arg)

    cos = cos.reshape(P_pad, D)
    sin = sin.reshape(P_pad, D)
    if P_pad != P:
        cos = cos[:P]
        sin = sin[:P]
    return cos.reshape(B, S, D), sin.reshape(B, S, D)


# -----------------------------------------------------------------------------
# Helpers / reference
# -----------------------------------------------------------------------------
def default_rope_init(head_dim, rope_theta=10000.0):
    """Deterministic 'default' ROPE_INIT_FUNCTIONS equivalent."""
    inv_freq = 1.0 / (
        rope_theta ** (jnp.arange(0, head_dim, 2, dtype=jnp.float32) / head_dim)
    )
    attention_scaling = 1.0
    return inv_freq, attention_scaling


def _reference(x, position_ids, inv_freq, attention_scaling):
    freqs = (
        position_ids.astype(jnp.float32)[:, :, None]
        * inv_freq.astype(jnp.float32)[None, None, :]
    )
    emb = jnp.concatenate([freqs, freqs], axis=-1)
    cos = (jnp.cos(emb) * attention_scaling).astype(x.dtype)
    sin = (jnp.sin(emb) * attention_scaling).astype(x.dtype)
    return cos, sin


def _check(name, x, position_ids, inv_freq, attention_scaling):
    cos, sin = smallthinker_rotary_embedding(x, position_ids, inv_freq, attention_scaling)
    jax.block_until_ready((cos, sin))

    cos_ref, sin_ref = _reference(x, position_ids, inv_freq, attention_scaling)

    B, S = position_ids.shape
    D = 2 * inv_freq.shape[0]
    assert cos.shape == (B, S, D) and sin.shape == (B, S, D), name
    assert cos.dtype == x.dtype and sin.dtype == x.dtype, name

    atol = 2e-2 if x.dtype == jnp.bfloat16 else 2e-3
    assert jnp.allclose(cos.astype(jnp.float32), cos_ref.astype(jnp.float32), atol=atol), name
    assert jnp.allclose(sin.astype(jnp.float32), sin_ref.astype(jnp.float32), atol=atol), name


if __name__ == "__main__":
    key = jax.random.PRNGKey(0)
    k1, k2, k3 = jax.random.split(key, 3)

    # Config 1: small prefill, bf16, head_dim=32 (full-width kernel path).
    B, S, HEAD_DIM, HIDDEN = 2, 8, 32, 32
    x1 = jax.random.normal(k1, (B, S, HIDDEN), dtype=jnp.bfloat16)
    pos1 = jnp.broadcast_to(jnp.arange(S, dtype=jnp.int32)[None, :] + 5, (B, S))
    inv1, scale1 = default_rope_init(HEAD_DIM, rope_theta=10000.0)
    _check("cfg1", x1, pos1, inv1, scale1)

    # Config 2: f32 outputs, head_dim=256 (half-width kernel path), non-unit scaling.
    B2, S2, HEAD_DIM2 = 2, 8, 256
    x2 = jax.random.normal(k2, (B2, S2, HEAD_DIM2), dtype=jnp.float32)
    pos2 = jnp.broadcast_to(jnp.arange(S2, dtype=jnp.int32)[None, :], (B2, S2))
    inv2, _ = default_rope_init(HEAD_DIM2, rope_theta=10000.0)
    _check("cfg2", x2, pos2, inv2, 0.75)

    # Config 3: longer sequence -> multi-tile grid with padding + slice-back.
    B3, S3, HEAD_DIM3 = 2, 330, 64
    x3 = jax.random.normal(k3, (B3, S3, HEAD_DIM3), dtype=jnp.bfloat16)
    pos3 = jnp.broadcast_to(jnp.arange(S3, dtype=jnp.int32)[None, :], (B3, S3))
    inv3, scale3 = default_rope_init(HEAD_DIM3, rope_theta=10000.0)
    _check("cfg3", x3, pos3, inv3, scale3)

    print("KERNEL_OK")
</pallas_src>

<mosaic_0001>
module attributes {stable_mosaic.version = 11 : i64} {
  func.func @_rope_kernel_fullwidth(%arg0: i32, %arg1: memref<1x16x1xf32, #tpu.memory_space<vmem>>, %arg2: memref<1x32xf32, #tpu.memory_space<vmem>>, %arg3: memref<1x16x32xbf16, #tpu.memory_space<vmem>>, %arg4: memref<1x16x32xbf16, #tpu.memory_space<vmem>>) attributes {dimension_semantics = [#tpu.dimension_semantics<parallel>], iteration_bounds = array<i64: 1>, scalar_prefetch = 0 : i64, scratch_operands = 0 : i64, tpu.core_type = #tpu.core_type<tc>, window_params = [{transform_indices = @transform_0, window_bounds = array<i64: 1, 16, 1>}, {pipeline_mode = #tpu.pipeline_mode<synchronous>, transform_indices = @transform_1, window_bounds = array<i64: 1, 32>}, {transform_indices = @transform_2, window_bounds = array<i64: 1, 16, 32>}, {transform_indices = @transform_3, window_bounds = array<i64: 1, 16, 32>}]} {
    %c0 = arith.constant 0 : index
    %c0_0 = arith.constant 0 : index
    %c0_1 = arith.constant 0 : index
    %0 = vector.load %arg1[%c0, %c0_0, %c0_1] : memref<1x16x1xf32, #tpu.memory_space<vmem>>, vector<1x16x1xf32>
    %1 = vector.shape_cast %0 : vector<1x16x1xf32> to vector<16x1xf32>
    %c0_2 = arith.constant 0 : index
    %c0_3 = arith.constant 0 : index
    %2 = vector.load %arg2[%c0_2, %c0_3] : memref<1x32xf32, #tpu.memory_space<vmem>>, vector<1x32xf32>
    %3 = vector.broadcast %1 : vector<16x1xf32> to vector<16x32xf32>
    %4 = vector.broadcast %2 : vector<1x32xf32> to vector<16x32xf32>
    %5 = arith.mulf %3, %4 : vector<16x32xf32>
    %6 = math.cos %5 : vector<16x32xf32>
    %7 = math.sin %5 : vector<16x32xf32>
    %8 = arith.truncf %6 : vector<16x32xf32> to vector<16x32xbf16>
    %c0_4 = arith.constant 0 : index
    %c0_5 = arith.constant 0 : index
    %c0_6 = arith.constant 0 : index
    %9 = vector.load %arg3[%c0_4, %c0_5, %c0_6] : memref<1x16x32xbf16, #tpu.memory_space<vmem>>, vector<1x16x32xbf16>
    %10 = vector.shape_cast %9 : vector<1x16x32xbf16> to vector<16x32xbf16>
    %11 = vector.shape_cast %8 : vector<16x32xbf16> to vector<1x16x32xbf16>
    tpu.vector_store %arg3[%c0_4, %c0_5, %c0_6], %11 {strides = array<i32>} : memref<1x16x32xbf16, #tpu.memory_space<vmem>>, vector<1x16x32xbf16>,
    %12 = arith.truncf %7 : vector<16x32xf32> to vector<16x32xbf16>
    %c0_7 = arith.constant 0 : index
    %c0_8 = arith.constant 0 : index
    %c0_9 = arith.constant 0 : index
    %13 = vector.load %arg4[%c0_7, %c0_8, %c0_9] : memref<1x16x32xbf16, #tpu.memory_space<vmem>>, vector<1x16x32xbf16>
    %14 = vector.shape_cast %13 : vector<1x16x32xbf16> to vector<16x32xbf16>
    %15 = vector.shape_cast %12 : vector<16x32xbf16> to vector<1x16x32xbf16>
    tpu.vector_store %arg4[%c0_7, %c0_8, %c0_9], %15 {strides = array<i32>} : memref<1x16x32xbf16, #tpu.memory_space<vmem>>, vector<1x16x32xbf16>,
    return
  }
  func.func @transform_0(%arg0: i32) -> (i32, i32, i32) {
    %c0_i32 = arith.constant 0 : i32
    %c0_i32_0 = arith.constant 0 : i32
    %c0_i32_1 = arith.constant 0 : i32
    return %arg0, %c0_i32, %c0_i32_0 : i32, i32, i32
  }
  func.func @transform_1(%arg0: i32) -> (i32, i32) {
    %c0_i32 = arith.constant 0 : i32
    %c0_i32_0 = arith.constant 0 : i32
    %c0_i32_1 = arith.constant 0 : i32
    return %c0_i32, %c0_i32_0 : i32, i32
  }
  func.func @transform_2(%arg0: i32) -> (i32, i32, i32) {
    %c0_i32 = arith.constant 0 : i32
    %c0_i32_0 = arith.constant 0 : i32
    %c0_i32_1 = arith.constant 0 : i32
    return %arg0, %c0_i32, %c0_i32_0 : i32, i32, i32
  }
  func.func @transform_3(%arg0: i32) -> (i32, i32, i32) {
    %c0_i32 = arith.constant 0 : i32
    %c0_i32_0 = arith.constant 0 : i32
    %c0_i32_1 = arith.constant 0 : i32
    return %arg0, %c0_i32, %c0_i32_0 : i32, i32, i32
  }
}

</mosaic_0001>

<bundles_post_ra>
// kernel: tpu_custom_call.1
= control target key start
LH: loop header
LB: loop body
LE: loop exit
PB: predicated region body
PF: predicated region fallthrough
CT: control target
= control target key end

     0   :  { %9 = vsyncpa [#allocation3], 0  ;;  %v773_v1 = vmov 0   ;;  %s958_s0 = inlined_call_operand.vmem [shape: f32[1,16,1], index: 0, kind: input, shape index: {}]   ;;  %s959_s1 = inlined_call_operand.vmem [shape: f32[1,32], index: 1, kind: input, shape index: {}]   ;;  %s960_s2 = inlined_call_operand.hbm [shape: bf16[1,16,32], index: 2, kind: output, shape index: {0}]   ;;  %s961_s3 = inlined_call_operand.hbm [shape: bf16[1,16,32], index: 3, kind: output, shape index: {1}]  }
   0x1   :  { %v15_v0 = vld [vmem:[%s958_s0] sm:$0xff]  ;;  %719 = vset.pattern.permute.xlu0 %v773_v1 }
   0x2   :  { %20 = vperm.xlu0 %719, %v15_v0  }
   0x3   :  { %10 = vsyncpa [#allocation5], 0  ;;  %v16_v2 = vld [vmem:[%s958_s0 + $0x8] sm:$0xff]  ;;  %v720_v3 = vld [vmem:[%s959_s1] ss:$0 sm:$0xff]  ;;  %s780_s0 = smov [#allocation2]  }
   0x4   :  { %v774_v25 = vmov 683565275   ;;  %v775_v27 = vmov 2475754826   ;;  %v776_v31 = vmov 2131351028  }
   0x5   :  { %v777_v34 = vmov 2102212464   ;;  %v778_v37 = vmov 920167782   ;;  %v779_v40 = vmov 1326507024  }
   0x6   :  { %s664_s1 = sshll.u32 %s780_s0, 4  ;;  %s666_s20 = sshll.u32 %s960_s2, 4  ;;  %s665_s1 = int_to_ptr.vmem [resolvable:$true] %s664_s1  ;;  %s667_s20 = int_to_ptr.hbm [resolvable:$true] %s666_s20 }
   0x7   :  { %s781_s21 = smov [#allocation4]   ;;  %s679_s25 = sshll.u32 %s961_s3, 4  ;;  %s680_s25 = int_to_ptr.hbm [resolvable:$true] %s679_s25 }
   0x8   :  { %s677_s22 = sshll.u32 %s781_s21, 4  ;;  %s782_s2 = smov 64   ;;  %s678_s22 = int_to_ptr.vmem [resolvable:$true] %s677_s22 }
   0x9   :  { %s783_s26 = smov 4  }
   0xa   :  { %25 = vperm.xlu0 %719, %v16_v2  }
  0x74   :  { %v21_v4 = vpop.permute.xlu0 %20 }
  0x75   :  { %v814_v5 = vmul.f32 %v720_v3, %v21_v4 }
  0x77   :  { %v33_v6 = vand.u32 2147483647, %v814_v5  ;;  %v36_v7 = vand.u32 2139095040, %v814_v5 }
  0x79   :  { %v37_v8 = vshrl.u32 %v36_v7, 23  ;;  %v40_v9 = vand.u32 8388607, %v33_v6 }
  0x7b   :  { %v696_v10 = vadd.s32 4294967169, %v37_v8  ;;  %v41_v11 = vor.u32 8388608, %v40_v9 }
  0x7c   :  { %v26_v12 = vpop.permute.xlu0 %25 }
  0x7d   :  { %v43_v13 = vadd.s32 1, %v696_v10  ;;  %v820_v14 = vmul.f32 %v720_v3, %v26_v12  ;;  %v822_v15 = vshll.u32 %v41_v11, 8 }
  0x7f   :  { %vm44_vm0 = vcmp.gt.s32.totalorder %v43_v13, 0  ;;  %v187_v17 = vand.u32 2147483647, %v820_v14  ;;  %v190_v18 = vand.u32 2139095040, %v820_v14  ;;  %v82_v21 = vand.u32 65535, %v822_v15 }
  0x80   :  { %v45_v16 = vsel %vm44_vm0, %v43_v13, 0  ;;  %v83_v22 = vshrl.u32 %v822_v15, 16 }
  0x81   :  { %v47_v19 = vand.u32 31, %v45_v16  ;;  %v191_v23 = vshrl.u32 %v190_v18, 23  ;;  %v46_v24 = vshrl.u32 %v45_v16, 5  ;;  %v832_v29 = vand.u32 8388607, %v187_v17 }
  0x83   :  { %v48_v20 = vsub.s32 32, %v47_v19  ;;  %v50_v26 = vshll.u32 %v774_v25, %v47_v19  ;;  %v53_v28 = vshll.u32 %v775_v27, %v47_v19  ;;  %v56_v33 = vshll.u32 %v776_v31, %v47_v19 }
  0x84   :  { %v59_v36 = vshll.u32 %v777_v34, %v47_v19  ;;  %v62_v39 = vshll.u32 %v778_v37, %v47_v19  ;;  %v699_v45 = vadd.s32 4294967169, %v191_v23  ;;  %vm65_vm1 = vcmp.lt.s32.totalorder %v46_v24, 1 }
  0x85   :  { %v51_v30 = vshrl.u32 %v775_v27, %v48_v20  ;;  %v54_v32 = vshrl.u32 %v776_v31, %v48_v20  ;;  %v57_v35 = vshrl.u32 %v777_v34, %v48_v20  ;;  %v60_v38 = vshrl.u32 %v778_v37, %v48_v20 }
  0x86   :  { %v63_v41 = vshrl.u32 %v779_v40, %v48_v20  ;;  %vm68_vm2 = vcmp.lt.s32.totalorder %v46_v24, 4  ;;  %v49_v48 = vshrl.u32 %v774_v25, %v48_v20  ;;  %vm67_vm3 = vcmp.lt.s32.totalorder %v46_v24, 3 }
  0x87   :  { %v52_v42 = vor.u32 %v51_v30, %v50_v26  ;;  %v55_v43 = vor.u32 %v54_v32, %v53_v28  ;;  %v58_v44 = vor.u32 %v57_v35, %v56_v33  ;;  %v61_v46 = vor.u32 %v60_v38, %v59_v36 }
  0x88   :  { %v64_v47 = vor.u32 %v63_v41, %v62_v39  ;;  %v197_v54 = vadd.s32 1, %v699_v45  ;;  %vm66_vm4 = vcmp.lt.s32.totalorder %v46_v24, 2  ;;  %v195_v2 = vor.u32 8388608, %v832_v29 }
  0x89   :  { %v70_v49 = vsel %vm68_vm2, %v58_v44, 2102212464  ;;  %v73_v50 = vsel %vm65_vm1, %v52_v42, %v55_v43  ;;  %v77_v51 = vsel %vm65_vm1, %v55_v43, %v58_v44  ;;  %v74_v52 = vsel %vm68_vm2, %v61_v46, 920167782 }
  0x8a   :  { %v78_v53 = vsel %vm68_vm2, %v64_v47, 1326507024  ;;  %v69_v55 = vsel %vm65_vm1, %v49_v48, %v52_v42  ;;  %v75_v56 = vsel %vm67_vm3, %v58_v44, %v74_v52  ;;  %v71_v58 = vsel %vm67_vm3, %v55_v43, %v70_v49 }
  0x8b   :  { %v79_v57 = vsel %vm67_vm3, %v61_v46, %v78_v53  ;;  %v76_v59 = vsel %vm66_vm4, %v73_v50, %v75_v56  ;;  %vm198_vm5 = vcmp.gt.s32.totalorder %v197_v54, 0  ;;  %v844_v3 = vsel %vm66_vm4, %v69_v55, %v71_v58 }
  0x8c   :  { %v80_v60 = vsel %vm66_vm4, %v77_v51, %v79_v57  ;;  %v106_v63 = vand.u32 65535, %v76_v59  ;;  %v107_v0 = vshrl.u32 %v76_v59, 16  ;;  %v199_v8 = vsel %vm198_vm5, %v197_v54, 0 }
  0x8d   :  { %v84_v61 = vand.u32 65535, %v80_v60  ;;  %v85_v62 = vshrl.u32 %v80_v60, 16  ;;  %v201_v30 = vand.u32 31, %v199_v8  ;;  %v851_v41 = vshrl.u32 %v199_v8, 5 }
  0x8e   :  { %v109_v11 = vmul.u32 %v107_v0, %v82_v21  ;;  %v110_v12 = vmul.u32 %v106_v63, %v83_v22  ;;  %v108_v18 = vmul.u32 %v106_v63, %v82_v21  ;;  %v111_v19 = vmul.u32 %v107_v0, %v83_v22 }
  0x8f   :  { %v87_v4 = vmul.u32 %v85_v62, %v82_v21  ;;  %v88_v7 = vmul.u32 %v84_v61, %v83_v22  ;;  %v86_v9 = vmul.u32 %v84_v61, %v82_v21  ;;  %v89_v10 = vmul.u32 %v85_v62, %v83_v22 }
  0x90   :  { %v112_v24 = vshll.u32 %v109_v11, 16  ;;  %v113_v26 = vshrl.u32 %v109_v11, 16  ;;  %v114_v29 = vshll.u32 %v110_v12, 16  ;;  %v115_v33 = vshrl.u32 %v110_v12, 16 }
  0x91   :  { %v90_v13 = vshll.u32 %v87_v4, 16  ;;  %v91_v16 = vshrl.u32 %v87_v4, 16  ;;  %v92_v20 = vshll.u32 %v88_v7, 16  ;;  %v93_v23 = vshrl.u32 %v88_v7, 16 }
  0x92   :  { %vm116_vm7 = vc.u32 %v108_v18, %v112_v24  ;;  %v118_v35 = vadd.s32 %v112_v24, %v108_v18  ;;  %v848_v39 = vsub.s32 32, %v201_v30  ;;  %v204_v45 = vshll.u32 %v774_v25, %v201_v30 }
  0x93   :  { %vm94_vm6 = vc.u32 %v86_v9, %v90_v13  ;;  %v96_v28 = vadd.s32 %v90_v13, %v86_v9  ;;  %v117_v38 = vsel %vm116_vm7, 1, %v773_v1  ;;  %v207_v48 = vshll.u32 %v775_v27, %v201_v30 }
  0x94   :  { %v95_v32 = vsel %vm94_vm6, 1, %v773_v1  ;;  %v119_v22 = vadd.s32 %v117_v38, %v111_v19  ;;  %vm120_vm9 = vc.u32 %v118_v35, %v114_v29  ;;  %v854_v44 = vadd.s32 %v118_v35, %v114_v29 }
  0x95   :  { %v97_v36 = vadd.s32 %v95_v32, %v89_v10  ;;  %vm98_vm8 = vc.u32 %v96_v28, %v92_v20  ;;  %v121_v43 = vsel %vm120_vm9, 1, %v773_v1  ;;  %v205_v47 = vshrl.u32 %v775_v27, %v848_v39 }
  0x96   :  { %v99_v21 = vsel %vm98_vm8, 1, %v773_v1  ;;  %v123_v46 = vadd.s32 %v121_v43, %v119_v22  ;;  %v208_v49 = vshrl.u32 %v776_v31, %v848_v39  ;;  %v210_v51 = vshll.u32 %v776_v31, %v201_v30 }
  0x97   :  { %v101_v42 = vadd.s32 %v99_v21, %v97_v36  ;;  %v211_v52 = vshrl.u32 %v777_v34, %v848_v39  ;;  %v213_v53 = vshll.u32 %v777_v34, %v201_v30  ;;  %v866_v55 = vor.u32 %v205_v47, %v204_v45 }
  0x98   :  { %v124_v54 = vadd.s32 %v123_v46, %v113_v26  ;;  %v868_v56 = vor.u32 %v208_v49, %v207_v48  ;;  %v214_v57 = vshrl.u32 %v778_v37, %v848_v39  ;;  %v216_v59 = vshll.u32 %v778_v37, %v201_v30 }
  0x99   :  { %v102_v50 = vadd.s32 %v101_v42, %v91_v16  ;;  %v212_v58 = vor.u32 %v211_v52, %v210_v51  ;;  %v217_v31 = vshrl.u32 %v779_v40, %v848_v39  ;;  %vm219_vm11 = vcmp.lt.s32.totalorder %v851_v41, 1 }
  0x9a   :  { %v125_v60 = vadd.s32 %v124_v54, %v115_v33  ;;  %v215_v61 = vor.u32 %v214_v57, %v213_v53  ;;  %v880_v62 = vshll.u32 %v195_v2, 8  ;;  %v126_v63 = vmul.u32 %v822_v15, %v844_v3 }
  0x9b   :  { %v872_v27 = vadd.s32 %v102_v50, %v93_v23  ;;  %v218_v34 = vor.u32 %v217_v31, %v216_v59  ;;  %vm222_vm12 = vcmp.lt.s32.totalorder %v851_v41, 4  ;;  %v227_v37 = vsel %vm219_vm11, %v866_v55, %v868_v56 }
  0x9c   :  { %v129_v0 = vadd.s32 1, %v125_v60  ;;  %vm221_vm13 = vcmp.lt.s32.totalorder %v851_v41, 3  ;;  %v228_v40 = vsel %vm222_vm12, %v215_v61, 920167782  ;;  %v231_v2 = vsel %vm219_vm11, %v868_v56, %v212_v58 }
  0x9d   :  { %vm128_vm10 = vc.u32 %v872_v27, %v854_v44  ;;  %v232_v15 = vsel %vm222_vm12, %v218_v34, 1326507024  ;;  %vm220_vm14 = vcmp.lt.s32.totalorder %v851_v41, 2  ;;  %v229_v4 = vsel %vm221_vm13, %v212_v58, %v228_v40 }
  0x9e   :  { %v130_v3 = vsel %vm128_vm10, %v129_v0, %v125_v60  ;;  %v233_v7 = vsel %vm221_vm13, %v215_v61, %v232_v15  ;;  %v230_v9 = vsel %vm220_vm14, %v227_v37, %v229_v4  ;;  %v236_v11 = vand.u32 65535, %v880_v62 }
  0x9f   :  { %v131_v8 = vadd.s32 %v130_v3, %v126_v63  ;;  %v234_v10 = vsel %vm220_vm14, %v231_v2, %v233_v7  ;;  %v237_v12 = vshrl.u32 %v880_v62, 16  ;;  %v261_v18 = vshrl.u32 %v230_v9, 16 }
  0xa0   :  { %v238_v13 = vand.u32 65535, %v234_v10  ;;  %v239_v16 = vshrl.u32 %v234_v10, 16  ;;  %v260_v20 = vand.u32 65535, %v230_v9  ;;  %v224_v31 = vsel %vm222_vm12, %v212_v58, 2102212464 }
  0xa1   :  { %v132_v19 = vadd.s32 536870912, %v131_v8  ;;  %v263_v28 = vmul.u32 %v261_v18, %v236_v11  ;;  %v265_v47 = vmul.u32 %v261_v18, %v237_v12  ;;  %v203_v60 = vshrl.u32 %v774_v25, %v848_v39 }
  0xa2   :  { %v241_v23 = vmul.u32 %v239_v16, %v236_v11  ;;  %v242_v24 = vmul.u32 %v238_v13, %v237_v12  ;;  %v240_v29 = vmul.u32 %v238_v13, %v236_v11  ;;  %v243_v33 = vmul.u32 %v239_v16, %v237_v12 }
  0xa3   :  { %v908_v26 = vshrl.u32 %v132_v19, 30  ;;  %v262_v35 = vmul.u32 %v260_v20, %v236_v11  ;;  %v266_v36 = vshll.u32 %v263_v28, 16  ;;  %v264_v22 = vmul.u32 %v260_v20, %v237_v12 }
  0xa4   :  { %v244_v30 = vshll.u32 %v241_v23, 16  ;;  %v246_v38 = vshll.u32 %v242_v24, 16  ;;  %v245_v53 = vshrl.u32 %v241_v23, 16  ;;  %v247_v61 = vshrl.u32 %v242_v24, 16 }
  0xa5   :  { %v134_v32 = vshll.u32 %v908_v26, 30  ;;  %vm270_vm1 = vc.u32 %v262_v35, %v266_v36  ;;  %v268_v49 = vshll.u32 %v264_v22, 16  ;;  %v272_v51 = vadd.s32 %v266_v36, %v262_v35 }
  0xa6   :  { %vm248_vm15 = vc.u32 %v240_v29, %v244_v30  ;;  %v250_v21 = vadd.s32 %v244_v30, %v240_v29  ;;  %v271_v50 = vsel %vm270_vm1, 1, %v773_v1  ;;  %v267_v37 = vshrl.u32 %v263_v28, 16 }
  0xa7   :  { %v135_v42 = vsub.s32 %v131_v8, %v134_v32  ;;  %v249_v43 = vsel %vm248_vm15, 1, %v773_v1  ;;  %v273_v57 = vadd.s32 %v271_v50, %v265_v47  ;;  %vm274_vm3 = vc.u32 %v272_v51, %v268_v49 }
  0xa8   :  { %v251_v45 = vadd.s32 %v249_v43, %v243_v33  ;;  %vm252_vm0 = vc.u32 %v250_v21, %v246_v38  ;;  %v275_v63 = vsel %vm274_vm3, 1, %v773_v1  ;;  %v223_v2 = vsel %vm219_vm11, %v203_v60, %v866_v55 }
  0xa9   :  { %vm136_vm2 = vcmp.lt.s32.totalorder %v135_v42, 0  ;;  %v137_v46 = vsub.s32 0, %v135_v42  ;;  %v253_v48 = vsel %vm252_vm0, 1, %v773_v1  ;;  %v277_v40 = vadd.s32 %v275_v63, %v273_v57 }
  0xaa   :  { %v255_v54 = vadd.s32 %v253_v48, %v251_v45  ;;  %v225_v15 = vsel %vm221_vm13, %v868_v56, %v224_v31  ;;  %v269_v3 = vshrl.u32 %v264_v22, 16  ;;  %v127_v25 = vadd.s32 %v854_v44, %v872_v27 }
  0xab   :  { %v138_v52 = vsel %vm136_vm2, %v137_v46, %v135_v42  ;;  %v278_v4 = vadd.s32 %v277_v40, %v267_v37  ;;  %v276_v1 = vadd.s32 %v272_v51, %v268_v49  ;;  %v226_v9 = vsel %vm220_vm14, %v223_v2, %v225_v15 }
  0xac   :  { %v139_v59 = vclz %v138_v52  ;;  %v256_v34 = vadd.s32 %v255_v54, %v245_v53  ;;  %v280_v13 = vmul.u32 %v880_v62, %v226_v9  ;;  %vm35_vm6 = vcmp.lt.s32.totalorder %v814_v5, 0 }
  0xad   :  { %v279_v10 = vadd.s32 %v278_v4, %v269_v3  ;;  %vm34_vm7 = vcmp.le.f32.partialorder %v33_v6, 0.7853982  ;;  %v157_v33 = vsub.s32 4, %v908_v26  ;;  %vm176_vm0 = vweird.f32 %v814_v5 }
  0xae   :  { %v697_v0 = vadd.s32 4294967294, %v139_v59  ;;  %v257_v58 = vadd.s32 %v256_v34, %v247_v61  ;;  %vm653_vm1 = vcmask 257024   ;;  %vm189_vm2 = vcmp.lt.s32.totalorder %v820_v14, 0 }
  0xaf   :  { %v283_v56 = vadd.s32 1, %v279_v10  ;;  %v158_v45 = vsel %vm35_vm6, %v157_v33, %v908_v26  ;;  %vm188_vm3 = vcmp.le.f32.partialorder %v187_v17, 0.7853982 }
  0xb0   :  { %vm698_vm4 = vcmp.lt.s32.totalorder %v697_v0, 0  ;;  %vm282_vm5 = vc.u32 %v257_v58, %v276_v1  ;;  %v160_v49 = vsel %vm34_vm7, 0, %v158_v45  ;;  %v281_v53 = vadd.s32 %v276_v1, %v257_v58 }
  0xb1   :  { %v142_v39 = vsel %vm698_vm4, 0, %v697_v0  ;;  %v284_v19 = vsel %vm282_vm5, %v283_v56, %v279_v10  ;;  %v485_v59 = vadd.s32 3, %v160_v49  ;;  %v177_v0 = vand.u32 3, %v160_v49 }
  0xb2   :  { %v143_v7 = vsub.s32 32, %v142_v39  ;;  %v147_v8 = vsub.s32 4294967266, %v142_v39  ;;  %v144_v55 = vshll.u32 %v135_v42, %v142_v39  ;;  %v285_v20 = vadd.s32 %v284_v19, %v280_v13 }
  0xb3   :  { %v486_v15 = vand.u32 3, %v485_v59  ;;  %vm178_vm10 = vcmp.lt.s32.totalorder %v177_v0, 2  ;;  %vm179_vm11 = vcmp.eq.s32.totalorder %v177_v0, 0  ;;  %vm182_vm12 = vcmp.eq.s32.totalorder %v177_v0, 2 }
  0xb4   :  { %v145_v11 = vshrl.u32 %v127_v25, %v143_v7  ;;  %v148_v12 = vadd.s32 127, %v147_v8  ;;  %v286_v27 = vadd.s32 536870912, %v285_v20 }
  0xb5   :  { %vm487_vm13 = vcmp.lt.s32.totalorder %v486_v15, 2  ;;  %vm488_vm14 = vcmp.eq.s32.totalorder %v486_v15, 0  ;;  %vm491_vm15 = vcmp.eq.s32.totalorder %v486_v15, 2 }
  0xb6   :  { %v146_v16 = vor.u32 %v145_v11, %v144_v55  ;;  %v149_v18 = vshll.u32 %v148_v12, 23  ;;  %v930_v28 = vshrl.u32 %v286_v27, 30 }
  0xb8   :  { %v150_v44 = vor.u32 4788187, %v149_v18  ;;  %v153_v24 = vcvt.s32.f32 %v146_v16  ;;  %v288_v29 = vshll.u32 %v930_v28, 30  ;;  %v311_v27 = vsub.s32 4, %v930_v28 }
  0xba   :  { %v151_v23 = vand.u32 2147483647, %v150_v44  ;;  %v289_v32 = vsub.s32 %v285_v20, %v288_v29  ;;  %v312_v29 = vsel %vm189_vm2, %v311_v27, %v930_v28 }
  0xbc   :  { %v154_v41 = vmul.f32 %v153_v24, %v151_v23  ;;  %vm290_vm8 = vcmp.lt.s32.totalorder %v289_v32, 0  ;;  %v291_v36 = vsub.s32 0, %v289_v32 }
  0xbe   :  { %v155_v30 = vxor.u32 2147483648, %v154_v41  ;;  %v292_v21 = vsel %vm290_vm8, %v291_v36, %v289_v32 }
  0xbf   :  { %v293_v42 = vclz %v292_v21 }
  0xc0   :  { %v156_v62 = vsel %vm35_vm6, %v155_v30, %v154_v41 }
  0xc1   :  { %v159_v35 = vsel %vm34_vm7, %v814_v5, %v156_v62  ;;  %v700_v47 = vadd.s32 4294967294, %v293_v42  ;;  %v314_v62 = vsel %vm188_vm3, 0, %v312_v29 }
  0xc2   :  { %v161_v38 = vmul.f32 %v159_v35, %v159_v35 }
  0xc3   :  { %vm701_vm9 = vcmp.lt.s32.totalorder %v700_v47, 0 }
  0xc4   :  { %v169_v22 = vmul.f32 -0.00019511016, %v161_v38  ;;  %v162_v43 = vmul.f32 -0.001358992, %v161_v38  ;;  %v296_v51 = vsel %vm701_vm9, 0, %v700_v47 }
  0xc5   :  { %v297_v54 = vsub.s32 32, %v296_v51  ;;  %v301_v57 = vsub.s32 4294967266, %v296_v51  ;;  %v298_v61 = vshll.u32 %v289_v32, %v296_v51 }
  0xc6   :  { %v170_v46 = vadd.f32 0.008332121, %v169_v22  ;;  %v163_v48 = vadd.f32 0.041655596, %v162_v43  ;;  %v331_v43 = vand.u32 3, %v314_v62 }
  0xc7   :  { %v299_v34 = vshrl.u32 %v281_v53, %v297_v54  ;;  %v302_v63 = vadd.s32 127, %v301_v57 }
  0xc8   :  { %v171_v50 = vmul.f32 %v170_v46, %v161_v38  ;;  %v164_v6 = vmul.f32 %v163_v48, %v161_v38  ;;  %vm332_vm4 = vcmp.lt.s32.totalorder %v331_v43, 2  ;;  %vm333_vm5 = vcmp.eq.s32.totalorder %v331_v43, 0 }
  0xc9   :  { %v300_v40 = vor.u32 %v299_v34, %v298_v61  ;;  %v303_v2 = vshll.u32 %v302_v63, 23  ;;  %vm336_vm6 = vcmp.eq.s32.totalorder %v331_v43, 2 }
  0xca   :  { %v172_v52 = vadd.f32 -0.16666654, %v171_v50  ;;  %v165_v31 = vadd.f32 -0.4999988, %v164_v6 }
  0xcb   :  { %v304_v25 = vor.u32 4788187, %v303_v2  ;;  %v307_v1 = vcvt.s32.f32 %v300_v40 }
  0xcc   :  { %v173_v60 = vmul.f32 %v172_v52, %v161_v38  ;;  %v166_v26 = vmul.f32 %v165_v31, %v161_v38  ;;  %v640_v38 = vadd.s32 3, %v314_v62 }
  0xcd   :  { %v305_v39 = vand.u32 2147483647, %v304_v25 }
  0xce   :  { %v174_v37 = vadd.f32 1.0, %v173_v60  ;;  %v167_v3 = vadd.f32 1.0, %v166_v26  ;;  %v641_v46 = vand.u32 3, %v640_v38 }
  0xcf   :  { %v308_v9 = vmul.f32 %v307_v1, %v305_v39 }
  0xd0   :  { %v175_v4 = vmul.f32 %v174_v37, %v159_v35  ;;  %v183_v58 = vxor.u32 2147483648, %v167_v3  ;;  %vm642_vm7 = vcmp.lt.s32.totalorder %v641_v46, 2  ;;  %vm643_vm8 = vcmp.eq.s32.totalorder %v641_v46, 0 }
  0xd1   :  { %v309_v13 = vxor.u32 2147483648, %v308_v9  ;;  %vm646_vm9 = vcmp.eq.s32.totalorder %v641_v46, 2 }
  0xd2   :  { %v180_v7 = vxor.u32 2147483648, %v175_v4  ;;  %v184_v8 = vsel %vm182_vm12, %v183_v58, %v175_v4  ;;  %v493_v11 = vsel %vm491_vm15, %v183_v58, %v175_v4 }
  0xd3   :  { %v310_v44 = vsel %vm189_vm2, %v309_v13, %v308_v9 }
  0xd4   :  { %v181_v10 = vsel %vm179_vm11, %v167_v3, %v180_v7  ;;  %v490_v55 = vsel %vm488_vm14, %v167_v3, %v180_v7  ;;  %v313_v23 = vsel %vm188_vm3, %v820_v14, %v310_v44 }
  0xd5   :  { %v185_v12 = vsel %vm178_vm10, %v181_v10, %v184_v8  ;;  %v494_v56 = vsel %vm487_vm13, %v490_v55, %v493_v11  ;;  %v315_v5 = vmul.f32 %v313_v23, %v313_v23  ;;  %vm330_vm10 = vweird.f32 %v820_v14 }
  0xd6   :  { %v186_v16 = vsel %vm176_vm0, nan, %v185_v12  ;;  %v495_v18 = vsel %vm176_vm0, nan, %v494_v56 }
  0xd7   :  { %v651_v19 = vpack.c.bf16 %v186_v16, %v186_v16  ;;  %v656_v20 = vpack.c.bf16 %v495_v18, %v495_v18  ;;  %v323_v24 = vmul.f32 -0.00019511016, %v315_v5  ;;  %v316_v41 = vmul.f32 -0.001358992, %v315_v5 }
  0xd9   :  { %654 = vst.msk [vmem:[#allocation2] sm:$0xf] %vm653_vm1, %v651_v19  ;;  %v324_v30 = vadd.f32 0.008332121, %v323_v24  ;;  %v317_v32 = vadd.f32 0.041655596, %v316_v41 }
  0xda   :  { %658 = vst.msk [vmem:[#allocation4] sm:$0xf] %vm653_vm1, %v656_v20 }
  0xdb   :  { %v325_v33 = vmul.f32 %v324_v30, %v315_v5  ;;  %v318_v35 = vmul.f32 %v317_v32, %v315_v5 }
  0xdd   :  { %v326_v17 = vadd.f32 -0.16666654, %v325_v33  ;;  %v319_v36 = vadd.f32 -0.4999988, %v318_v35 }
  0xdf   :  { %v327_v21 = vmul.f32 %v326_v17, %v315_v5  ;;  %v320_v22 = vmul.f32 %v319_v36, %v315_v5 }
  0xe1   :  { %v328_v42 = vadd.f32 1.0, %v327_v21  ;;  %v321_v45 = vadd.f32 1.0, %v320_v22 }
  0xe3   :  { %v329_v47 = vmul.f32 %v328_v42, %v313_v23  ;;  %v337_v48 = vxor.u32 2147483648, %v321_v45 }
  0xe5   :  { %v334_v49 = vxor.u32 2147483648, %v329_v47  ;;  %v338_v50 = vsel %vm336_vm6, %v337_v48, %v329_v47  ;;  %v648_v51 = vsel %vm646_vm9, %v337_v48, %v329_v47 }
  0xe7   :  { %v335_v28 = vsel %vm333_vm5, %v321_v45, %v334_v49  ;;  %v645_v6 = vsel %vm643_vm8, %v321_v45, %v334_v49 }
  0xe8   :  { %v339_v52 = vsel %vm332_vm4, %v335_v28, %v338_v50  ;;  %v649_v53 = vsel %vm642_vm7, %v645_v6, %v648_v51 }
  0xe9   :  { %v340_v54 = vsel %vm330_vm10, nan, %v339_v52  ;;  %v650_v57 = vsel %vm330_vm10, nan, %v649_v53 }
  0xea   :  { %v652_v59 = vpack.c.bf16 %v340_v54, %v340_v54  ;;  %v657_v31 = vpack.c.bf16 %v650_v57, %v650_v57 }
  0xec   :  { %655 = vst.msk [vmem:[#allocation2 + $0x4] sm:$0xf] %vm653_vm1, %v652_v59 }
  0xed   :  { %672 = dma.vmem_to_hbm [thread:$0]  %s665_s1, 128, %s667_s20, [#allocation3], %s782_s2, %s782_s2, %s783_s26   ;;  %659 = vst.msk [vmem:[#allocation4 + $0x4] sm:$0xf] %vm653_vm1, %v657_v31 }
  0xee   :  { %685 = dma.vmem_to_hbm [thread:$0]  %s678_s22, 128, %s680_s25, [#allocation5], %s782_s2, %s782_s2, %s783_s26  }
  0xef   :  { %769 = dma.done.wait [#allocation3], 128  }
  0xf0   :  { %770 = vsyncadd [#allocation3], 4294967168 }
  0xf1   :  { %771 = dma.done.wait [#allocation5], 128  }
  0xf2   :  { %772 = vsyncadd [#allocation5], 4294967168 }
  0xf3   :  { %694 = vsyncpa [#allocation3], 1 }
  0xf4   :  { %695 = vsyncpa [#allocation5], 1 }

</bundles_post_ra>
